<compile_context>
chip_gen: v7x
topology: tpu7x:2x2x1
jax: 0.10.0
libtpu: 0.0.40
codegen_flags: <defaults>
</compile_context>

<pallas_src>
import jax
import jax.numpy as jnp
from jax.experimental import pallas as pl
from jax.experimental.pallas import tpu as pltpu

LANE = 128    # TPU lane width: H and A padded to a multiple of this
MAX_TB = 512  # batch-tile size for very large batches (measured sweet spot)


def _round_up(x, m):
    return ((x + m - 1) // m) * m


# ---------------------------------------------------------------------------
# Pallas kernel: whole MLP hot path (3 matmuls + bias + relu/tanh + affine)
# Refs:
#   s_ref   (TB, S )   state tile                      (streamed)
#   g_ref   (TB, S )   subgoal tile                    (streamed)
#   w1a_ref (S,  Hp)   state-half of W1.T, lane-padded (resident)
#   w1b_ref (S,  Hp)   subgoal-half of W1.T            (resident)
#   w2_ref  (Hp, Hp)   W2.T, zero-padded               (resident)
#   w3_ref  (Hp, Ap)   W3.T, zero-padded               (resident)
#   b12_ref (2,  Hp)   rows = [b1, b2], zero-padded    (resident)
#   tail_ref(3,  Ap)   rows = [b3, amax, aoff]         (resident)
#   o_ref   (TB, Ap)   lane-dense output slab
# ---------------------------------------------------------------------------
def actor_kernel(s_ref, g_ref, w1a_ref, w1b_ref, w2_ref, w3_ref,
                 b12_ref, tail_ref, o_ref):
    # Layer 1: split matmul replaces concat([state, subgoal]) @ W1.T
    h1 = jnp.dot(s_ref[...], w1a_ref[...], preferred_element_type=jnp.float32)
    h1 = h1 + jnp.dot(g_ref[...], w1b_ref[...],
                      preferred_element_type=jnp.float32)
    h1 = jnp.maximum(h1 + b12_ref[0:1, :], 0.0)                     # (TB, Hp)

    # Layer 2
    h2 = jnp.dot(h1, w2_ref[...], preferred_element_type=jnp.float32)
    h2 = jnp.maximum(h2 + b12_ref[1:2, :], 0.0)                     # (TB, Hp)

    # Layer 3 + tanh + affine (b3 / amax / aoff packed in tail_ref).
    # Padded output lanes: tanh(0)*0 + 0 == 0 (sliced off by the wrapper).
    h3 = jnp.dot(h2, w3_ref[...], preferred_element_type=jnp.float32)
    out = jnp.tanh(h3 + tail_ref[0:1, :])                           # (TB, Ap)
    o_ref[...] = out * tail_ref[1:2, :] + tail_ref[2:3, :]


# ---------------------------------------------------------------------------
# One-time parameter packing (outside the hot path).
# PyTorch stores Linear weights as (out_features, in_features); we transpose,
# split W1, and ZERO-pad H/A out to 128 lanes once here so the per-call
# wrapper does no layout work at all and the kernel uses full vregs.
# ---------------------------------------------------------------------------
def prepare_actor_params(params, action_max_bound, action_offset, state_dim):
    S = state_dim
    w1 = jnp.asarray(params["w1"], jnp.float32)          # (H, 2S)
    w2 = jnp.asarray(params["w2"], jnp.float32)          # (H, H)
    w3 = jnp.asarray(params["w3"], jnp.float32)          # (A, H)
    H = w1.shape[0]
    A = w3.shape[0]
    Hp = _round_up(H, LANE)
    Ap = _round_up(A, LANE)

    w1t = w1.T                                            # (2S, H)
    w1a = jnp.zeros((S, Hp), jnp.float32).at[:, :H].set(w1t[:S, :])
    w1b = jnp.zeros((S, Hp), jnp.float32).at[:, :H].set(w1t[S:, :])
    w2p = jnp.zeros((Hp, Hp), jnp.float32).at[:H, :H].set(w2.T)
    w3p = jnp.zeros((Hp, Ap), jnp.float32).at[:H, :A].set(w3.T)

    b12 = jnp.zeros((2, Hp), jnp.float32)
    b12 = b12.at[0, :H].set(jnp.asarray(params["b1"], jnp.float32))
    b12 = b12.at[1, :H].set(jnp.asarray(params["b2"], jnp.float32))

    amax = jnp.broadcast_to(
        jnp.asarray(action_max_bound, jnp.float32).reshape(-1), (A,))
    aoff = jnp.broadcast_to(
        jnp.asarray(action_offset, jnp.float32).reshape(-1), (A,))
    tail = jnp.zeros((3, Ap), jnp.float32)
    tail = tail.at[0, :A].set(jnp.asarray(params["b3"], jnp.float32))
    tail = tail.at[1, :A].set(amax)
    tail = tail.at[2, :A].set(aoff)

    return {"w1a": w1a, "w1b": w1b, "w2": w2p, "w3": w3p,
            "b12": b12, "tail": tail,
            "S": S, "H": H, "A": A, "Hp": Hp, "Ap": Ap}


# ---------------------------------------------------------------------------
# Hot-path wrapper: one pallas_call.
#   * B <= 512: single grid step, block == full arrays (no batch pad/copy).
#   * B  > 512: grid over 512-row tiles (weights stay VMEM-resident), batch
#     axis "parallel" so it shards across TensorCores on v7x.
# ---------------------------------------------------------------------------
def actor_forward(state, subgoal, prep):
    B, S = state.shape
    Hp, Ap, A = prep["Hp"], prep["Ap"], prep["A"]

    if B <= MAX_TB:
        # Single step: zero per-step pipeline overhead, zero wrapper copies.
        TB, Bp, grid = B, B, (1,)
    else:
        TB = MAX_TB
        Bp = pl.cdiv(B, TB) * TB
        grid = (Bp // TB,)
        if Bp != B:
            # TODO(synk): replace this pad (and the final slice) with a masked
            # ragged-last-tile store or a tiny second call to avoid the extra
            # HBM copies for large non-multiple batches.
            pad = ((0, Bp - B), (0, 0))
            state = jnp.pad(state, pad)
            subgoal = jnp.pad(subgoal, pad)

    batch_spec = pl.BlockSpec((TB, S), lambda i: (i, 0))
    resident = lambda i: (0, 0)   # same block every step -> stays in VMEM

    out = pl.pallas_call(
        actor_kernel,
        out_shape=jax.ShapeDtypeStruct((Bp, Ap), jnp.float32),
        grid=grid,
        in_specs=[
            batch_spec,                              # state tile
            batch_spec,                              # subgoal tile
            pl.BlockSpec((S, Hp), resident),         # w1a (state half of W1.T)
            pl.BlockSpec((S, Hp), resident),         # w1b (subgoal half)
            pl.BlockSpec((Hp, Hp), resident),        # w2
            pl.BlockSpec((Hp, Ap), resident),        # w3
            pl.BlockSpec((2, Hp), resident),         # [b1; b2]
            pl.BlockSpec((3, Ap), resident),         # [b3; amax; aoff]
        ],
        out_specs=pl.BlockSpec((TB, Ap), lambda i: (i, 0)),  # lane-dense slab
        compiler_params=pltpu.CompilerParams(
            # "parallel" lets the batch axis shard across the 2 TensorCores on
            # v7x; on v5e/v6e the grid is a serial loop (hence single-step path
            # above). TODO(synk): try pltpu.CORE_PARALLEL on v7x for large B.
            dimension_semantics=("parallel",)),
    )(state, subgoal, prep["w1a"], prep["w1b"], prep["w2"], prep["w3"],
      prep["b12"], prep["tail"])

    # Lane-dense (Bp, 128·k) slab -> user-visible (B, A)
    return out[:B, :A]


# ---------------------------------------------------------------------------
# Deterministic parameter init (mimics torch.nn.Linear default U(-k, k))
# ---------------------------------------------------------------------------
def init_params(key, state_dim, action_dim, hidden_size):
    def linear(key, fan_in, fan_out):
        kw, kb = jax.random.split(key)
        bound = 1.0 / jnp.sqrt(fan_in)
        w = jax.random.uniform(kw, (fan_out, fan_in), jnp.float32, -bound, bound)
        b = jax.random.uniform(kb, (fan_out,), jnp.float32, -bound, bound)
        return w, b

    k1, k2, k3 = jax.random.split(key, 3)
    w1, b1 = linear(k1, state_dim * 2, hidden_size)
    w2, b2 = linear(k2, hidden_size, hidden_size)
    w3, b3 = linear(k3, hidden_size, action_dim)
    return {"w1": w1, "b1": b1, "w2": w2, "b2": b2, "w3": w3, "b3": b3}


# ---------------------------------------------------------------------------
# Pure-JAX reference (mirrors the PyTorch module exactly)
# ---------------------------------------------------------------------------
def actor_ref(state, subgoal, params, action_max_bound, action_offset):
    x = jnp.concatenate([state, subgoal], axis=1)
    h1 = jnp.maximum(x @ params["w1"].T + params["b1"], 0.0)
    h2 = jnp.maximum(h1 @ params["w2"].T + params["b2"], 0.0)
    out = jnp.tanh(h2 @ params["w3"].T + params["b3"])
    return out * action_max_bound + action_offset


if __name__ == "__main__":
    state_dim = 16
    action_dim = 8
    hidden_size = 64
    batch = 16          # small demo; exercises the single-grid-step fast path

    key = jax.random.PRNGKey(0)
    kp, ks, kg = jax.random.split(key, 3)

    params = init_params(kp, state_dim, action_dim, hidden_size)
    state = jax.random.normal(ks, (batch, state_dim), jnp.float32)
    subgoal = jax.random.normal(kg, (batch, state_dim), jnp.float32)

    action_max_bound = jnp.full((action_dim,), 2.0, jnp.float32)
    action_offset = jnp.full((action_dim,), 0.5, jnp.float32)

    # One-time packing (outside the hot path).
    prep = prepare_actor_params(params, action_max_bound, action_offset,
                                state_dim)

    out = actor_forward(state, subgoal, prep)
    out = jax.block_until_ready(out)

    ref = actor_ref(state, subgoal, params, action_max_bound, action_offset)
    assert out.shape == (batch, action_dim)
    assert jnp.allclose(out, ref, atol=1e-4, rtol=1e-4), "mismatch vs reference"

    print("KERNEL_OK")
</pallas_src>

<mosaic_0001>
module attributes {stable_mosaic.version = 11 : i64} {
  func.func @actor_kernel(%arg0: i32, %arg1: memref<16x16xf32, #tpu.memory_space<vmem>>, %arg2: memref<16x16xf32, #tpu.memory_space<vmem>>, %arg3: memref<16x128xf32, #tpu.memory_space<vmem>>, %arg4: memref<16x128xf32, #tpu.memory_space<vmem>>, %arg5: memref<128x128xf32, #tpu.memory_space<vmem>>, %arg6: memref<128x128xf32, #tpu.memory_space<vmem>>, %arg7: memref<2x128xf32, #tpu.memory_space<vmem>>, %arg8: memref<3x128xf32, #tpu.memory_space<vmem>>, %arg9: memref<16x128xf32, #tpu.memory_space<vmem>>) attributes {dimension_semantics = [#tpu.dimension_semantics<parallel>], iteration_bounds = array<i64: 1>, scalar_prefetch = 0 : i64, scratch_operands = 0 : i64, tpu.core_type = #tpu.core_type<tc>, window_params = [{transform_indices = @transform_0, window_bounds = array<i64: 16, 16>}, {transform_indices = @transform_1, window_bounds = array<i64: 16, 16>}, {pipeline_mode = #tpu.pipeline_mode<synchronous>, transform_indices = @transform_2, window_bounds = array<i64: 16, 128>}, {pipeline_mode = #tpu.pipeline_mode<synchronous>, transform_indices = @transform_3, window_bounds = array<i64: 16, 128>}, {pipeline_mode = #tpu.pipeline_mode<synchronous>, transform_indices = @transform_4, window_bounds = array<i64: 128, 128>}, {pipeline_mode = #tpu.pipeline_mode<synchronous>, transform_indices = @transform_5, window_bounds = array<i64: 128, 128>}, {pipeline_mode = #tpu.pipeline_mode<synchronous>, transform_indices = @transform_6, window_bounds = array<i64: 2, 128>}, {pipeline_mode = #tpu.pipeline_mode<synchronous>, transform_indices = @transform_7, window_bounds = array<i64: 3, 128>}, {transform_indices = @transform_8, window_bounds = array<i64: 16, 128>}]} {
    %c0 = arith.constant 0 : index
    %c0_0 = arith.constant 0 : index
    %0 = vector.load %arg1[%c0, %c0_0] : memref<16x16xf32, #tpu.memory_space<vmem>>, vector<16x16xf32>
    %c0_1 = arith.constant 0 : index
    %c0_2 = arith.constant 0 : index
    %1 = vector.load %arg3[%c0_1, %c0_2] : memref<16x128xf32, #tpu.memory_space<vmem>>, vector<16x128xf32>
    %cst = arith.constant dense<0.000000e+00> : vector<16x128xf32>
    %2 = tpu.matmul %0, %1, %cst {dimension_numbers = #tpu.dot_dimension_numbers<[1], [0], [0], [1], [0, 0, 1, 1], [], []>} : vector<16x16xf32>, vector<16x128xf32>, vector<16x128xf32> -> vector<16x128xf32>
    %c0_3 = arith.constant 0 : index
    %c0_4 = arith.constant 0 : index
    %3 = vector.load %arg2[%c0_3, %c0_4] : memref<16x16xf32, #tpu.memory_space<vmem>>, vector<16x16xf32>
    %c0_5 = arith.constant 0 : index
    %c0_6 = arith.constant 0 : index
    %4 = vector.load %arg4[%c0_5, %c0_6] : memref<16x128xf32, #tpu.memory_space<vmem>>, vector<16x128xf32>
    %cst_7 = arith.constant dense<0.000000e+00> : vector<16x128xf32>
    %5 = tpu.matmul %3, %4, %cst_7 {dimension_numbers = #tpu.dot_dimension_numbers<[1], [0], [0], [1], [0, 0, 1, 1], [], []>} : vector<16x16xf32>, vector<16x128xf32>, vector<16x128xf32> -> vector<16x128xf32>
    %6 = arith.addf %2, %5 : vector<16x128xf32>
    %c0_8 = arith.constant 0 : index
    %c0_9 = arith.constant 0 : index
    %7 = vector.load %arg7[%c0_8, %c0_9] : memref<2x128xf32, #tpu.memory_space<vmem>>, vector<1x128xf32>
    %8 = vector.broadcast %7 : vector<1x128xf32> to vector<16x128xf32>
    %9 = arith.addf %6, %8 : vector<16x128xf32>
    %cst_10 = arith.constant 0.000000e+00 : f32
    %10 = vector.broadcast %cst_10 : f32 to vector<16x128xf32>
    %11 = arith.maximumf %9, %10 : vector<16x128xf32>
    %c0_11 = arith.constant 0 : index
    %c0_12 = arith.constant 0 : index
    %12 = vector.load %arg5[%c0_11, %c0_12] : memref<128x128xf32, #tpu.memory_space<vmem>>, vector<128x128xf32>
    %cst_13 = arith.constant dense<0.000000e+00> : vector<16x128xf32>
    %13 = tpu.matmul %11, %12, %cst_13 {dimension_numbers = #tpu.dot_dimension_numbers<[1], [0], [0], [1], [0, 0, 1, 1], [], []>} : vector<16x128xf32>, vector<128x128xf32>, vector<16x128xf32> -> vector<16x128xf32>
    %c1 = arith.constant 1 : index
    %c0_14 = arith.constant 0 : index
    %14 = vector.load %arg7[%c1, %c0_14] : memref<2x128xf32, #tpu.memory_space<vmem>>, vector<1x128xf32>
    %15 = vector.broadcast %14 : vector<1x128xf32> to vector<16x128xf32>
    %16 = arith.addf %13, %15 : vector<16x128xf32>
    %cst_15 = arith.constant 0.000000e+00 : f32
    %17 = vector.broadcast %cst_15 : f32 to vector<16x128xf32>
    %18 = arith.maximumf %16, %17 : vector<16x128xf32>
    %c0_16 = arith.constant 0 : index
    %c0_17 = arith.constant 0 : index
    %19 = vector.load %arg6[%c0_16, %c0_17] : memref<128x128xf32, #tpu.memory_space<vmem>>, vector<128x128xf32>
    %cst_18 = arith.constant dense<0.000000e+00> : vector<16x128xf32>
    %20 = tpu.matmul %18, %19, %cst_18 {dimension_numbers = #tpu.dot_dimension_numbers<[1], [0], [0], [1], [0, 0, 1, 1], [], []>} : vector<16x128xf32>, vector<128x128xf32>, vector<16x128xf32> -> vector<16x128xf32>
    %c0_19 = arith.constant 0 : index
    %c0_20 = arith.constant 0 : index
    %21 = vector.load %arg8[%c0_19, %c0_20] : memref<3x128xf32, #tpu.memory_space<vmem>>, vector<1x128xf32>
    %22 = vector.broadcast %21 : vector<1x128xf32> to vector<16x128xf32>
    %23 = arith.addf %20, %22 : vector<16x128xf32>
    %24 = math.tanh %23 : vector<16x128xf32>
    %c1_21 = arith.constant 1 : index
    %c0_22 = arith.constant 0 : index
    %25 = vector.load %arg8[%c1_21, %c0_22] : memref<3x128xf32, #tpu.memory_space<vmem>>, vector<1x128xf32>
    %26 = vector.broadcast %25 : vector<1x128xf32> to vector<16x128xf32>
    %27 = arith.mulf %24, %26 : vector<16x128xf32>
    %c2 = arith.constant 2 : index
    %c0_23 = arith.constant 0 : index
    %28 = vector.load %arg8[%c2, %c0_23] : memref<3x128xf32, #tpu.memory_space<vmem>>, vector<1x128xf32>
    %29 = vector.broadcast %28 : vector<1x128xf32> to vector<16x128xf32>
    %30 = arith.addf %27, %29 : vector<16x128xf32>
    %c0_24 = arith.constant 0 : index
    %c0_25 = arith.constant 0 : index
    %31 = vector.load %arg9[%c0_24, %c0_25] : memref<16x128xf32, #tpu.memory_space<vmem>>, vector<16x128xf32>
    tpu.vector_store %arg9[%c0_24, %c0_25], %30 {strides = array<i32>} : memref<16x128xf32, #tpu.memory_space<vmem>>, vector<16x128xf32>,
    return
  }
  func.func @transform_0(%arg0: i32) -> (i32, i32) {
    %c0_i32 = arith.constant 0 : i32
    %c0_i32_0 = arith.constant 0 : i32
    return %arg0, %c0_i32 : i32, i32
  }
  func.func @transform_1(%arg0: i32) -> (i32, i32) {
    %c0_i32 = arith.constant 0 : i32
    %c0_i32_0 = arith.constant 0 : i32
    return %arg0, %c0_i32 : i32, i32
  }
  func.func @transform_2(%arg0: i32) -> (i32, i32) {
    %c0_i32 = arith.constant 0 : i32
    %c0_i32_0 = arith.constant 0 : i32
    %c0_i32_1 = arith.constant 0 : i32
    return %c0_i32, %c0_i32_0 : i32, i32
  }
  func.func @transform_3(%arg0: i32) -> (i32, i32) {
    %c0_i32 = arith.constant 0 : i32
    %c0_i32_0 = arith.constant 0 : i32
    %c0_i32_1 = arith.constant 0 : i32
    return %c0_i32, %c0_i32_0 : i32, i32
  }
  func.func @transform_4(%arg0: i32) -> (i32, i32) {
    %c0_i32 = arith.constant 0 : i32
    %c0_i32_0 = arith.constant 0 : i32
    %c0_i32_1 = arith.constant 0 : i32
    return %c0_i32, %c0_i32_0 : i32, i32
  }
  func.func @transform_5(%arg0: i32) -> (i32, i32) {
    %c0_i32 = arith.constant 0 : i32
    %c0_i32_0 = arith.constant 0 : i32
    %c0_i32_1 = arith.constant 0 : i32
    return %c0_i32, %c0_i32_0 : i32, i32
  }
  func.func @transform_6(%arg0: i32) -> (i32, i32) {
    %c0_i32 = arith.constant 0 : i32
    %c0_i32_0 = arith.constant 0 : i32
    %c0_i32_1 = arith.constant 0 : i32
    return %c0_i32, %c0_i32_0 : i32, i32
  }
  func.func @transform_7(%arg0: i32) -> (i32, i32) {
    %c0_i32 = arith.constant 0 : i32
    %c0_i32_0 = arith.constant 0 : i32
    %c0_i32_1 = arith.constant 0 : i32
    return %c0_i32, %c0_i32_0 : i32, i32
  }
  func.func @transform_8(%arg0: i32) -> (i32, i32) {
    %c0_i32 = arith.constant 0 : i32
    %c0_i32_0 = arith.constant 0 : i32
    return %arg0, %c0_i32 : i32, i32
  }
}

</mosaic_0001>

<bundles_post_ra>
// kernel: tpu_custom_call.1
= control target key start
LH: loop header
LB: loop body
LE: loop exit
PB: predicated region body
PF: predicated region fallthrough
CT: control target
= control target key end

     0   :  { %13 = vsyncpa [#allocation3], 0  ;;  %s1111_s0 = inlined_call_operand.hbm [shape: f32[16,16], index: 0, kind: input, shape index: {}]   ;;  %s1112_s1 = inlined_call_operand.hbm [shape: f32[16,16], index: 1, kind: input, shape index: {}]   ;;  %s1113_s2 = inlined_call_operand.hbm [shape: f32[16,128], index: 2, kind: input, shape index: {}]   ;;  %s1114_s3 = inlined_call_operand.hbm [shape: f32[16,128], index: 3, kind: input, shape index: {}]   ;;  %s1115_s4 = inlined_call_operand.hbm [shape: f32[128,128], index: 4, kind: input, shape index: {}]   ;;  %s1116_s5 = inlined_call_operand.hbm [shape: f32[128,128], index: 5, kind: input, shape index: {}]   ;;  %s1117_s6 = inlined_call_operand.vmem [shape: f32[2,128], index: 6, kind: input, shape index: {}]   ;;  %s1118_s7 = inlined_call_operand.vmem [shape: f32[3,128], index: 7, kind: input, shape index: {}]   ;;  %s1119_s8 = inlined_call_operand.hbm [shape: f32[16,128], index: 8, kind: output, shape index: {}]  }
   0x1   :  { %14 = vsyncpa [#allocation6], 0 }
   0x2   :  { %15 = vsyncpa [#allocation9], 0 }
   0x3   :  { %16 = vsyncpa [#allocation12], 0 }
   0x4   :  { %17 = vsyncpa [#allocation4], 0  ;;  %s912_s27 = smov [#allocation5]   ;;  %s913_s29 = smov [#allocation8]  }
   0x5   :  { %s35_s28 = sshll.u32 %s912_s27, 4  ;;  %s59_s30 = sshll.u32 %s913_s29, 4  ;;  %s36_s28 = int_to_ptr.vmem [resolvable:$true] %s35_s28  ;;  %s966_s30 = int_to_ptr.vmem [resolvable:$true] %s59_s30 }
   0x6   :  { %s748_s11 = scalar_lea.hbm %s1112_s1, 256 }
   0x7   :  { %p749_p0 = scmp.ne.s32.totalorder %s1112_s1, %s748_s11  ;;  %p752_p1 = scmp.lt.u32.totalorder %s748_s11, %s1112_s1 }
   0x9   :  { %p754_p2 = pnand %p752_p1, %p749_p0 }
   0xb   :  { %757 = shalt.err (!%p754_p2)
}
   0xc   :  { %s758_s16 = scalar_lea.vmem %s36_s28, 256  ;;  %p763_p4 = scmp.lt.s32.totalorder %s36_s28, %s36_s28 }
   0xd   :  { %p759_p3 = scmp.ne.s32.totalorder %s36_s28, %s758_s16  ;;  %p764_p5 = scmp.lt.s32.totalorder %s758_s16, %s758_s16 }
   0xf   :  { %p765_p6 = por %p764_p5, %p763_p4 }
  0x11   :  { %p766_p7 = pnand %p765_p6, %p759_p3 }
  0x13   :  { %769 = shalt.err (!%p766_p7)
}
  0x14   :  { %s914_s17 = smov 128   ;;  %s915_s18 = smov 8  }
  0x15   :  { %41 = dma.hbm_to_vmem [thread:$0]  %s1112_s1, 256, %s36_s28, [#allocation6], %s914_s17, %s914_s17, %s915_s18  }
  0x16   :  { %s770_s23 = scalar_lea.hbm %s1114_s3, 256 }
  0x17   :  { %p771_p8 = scmp.ne.s32.totalorder %s1114_s3, %s770_s23  ;;  %p774_p9 = scmp.lt.u32.totalorder %s770_s23, %s1114_s3 }
  0x19   :  { %p776_p10 = pnand %p774_p9, %p771_p8 }
  0x1b   :  { %779 = shalt.err (!%p776_p10)
}
  0x1c   :  { %s780_s29 = scalar_lea.vmem %s966_s30, 256  ;;  %p785_p12 = scmp.lt.s32.totalorder %s966_s30, %s966_s30 }
  0x1d   :  { %p781_p11 = scmp.ne.s32.totalorder %s966_s30, %s780_s29  ;;  %p786_p13 = scmp.lt.s32.totalorder %s780_s29, %s780_s29 }
  0x1f   :  { %p787_p0 = por %p786_p13, %p785_p12 }
  0x21   :  { %p788_p1 = pnand %p787_p0, %p781_p11 }
  0x23   :  { %791 = shalt.err (!%p788_p1)
}
  0x24   :  { %65 = dma.hbm_to_vmem [thread:$0]  %s1114_s3, 256, %s966_s30, [#allocation9], %s914_s17, %s914_s17, %s915_s18  }
  0x25   :  { %s916_s9 = smov [#allocation2]   ;;  %s917_s11 = smov [#allocation7]  }
  0x26   :  { %s23_s10 = sshll.u32 %s916_s9, 4  ;;  %s47_s12 = sshll.u32 %s917_s11, 4  ;;  %s24_s10 = int_to_ptr.vmem [resolvable:$true] %s23_s10  ;;  %s1003_s12 = int_to_ptr.vmem [resolvable:$true] %s47_s12 }
  0x27   :  { %s792_s15 = scalar_lea.hbm %s1111_s0, 256 }
  0x28   :  { %p793_p2 = scmp.ne.s32.totalorder %s1111_s0, %s792_s15  ;;  %p796_p3 = scmp.lt.u32.totalorder %s792_s15, %s1111_s0 }
  0x2a   :  { %p798_p4 = pnand %p796_p3, %p793_p2 }
  0x2c   :  { %801 = shalt.err (!%p798_p4)
}
  0x2d   :  { %s802_s3 = scalar_lea.vmem %s24_s10, 256  ;;  %p807_p6 = scmp.lt.s32.totalorder %s24_s10, %s24_s10 }
  0x2e   :  { %p803_p5 = scmp.ne.s32.totalorder %s24_s10, %s802_s3  ;;  %p808_p7 = scmp.lt.s32.totalorder %s802_s3, %s802_s3 }
  0x30   :  { %p809_p8 = por %p808_p7, %p807_p6 }
  0x32   :  { %p810_p9 = pnand %p809_p8, %p803_p5 }
  0x34   :  { %813 = shalt.err (!%p810_p9)
}
  0x35   :  { %29 = dma.hbm_to_vmem [thread:$0]  %s1111_s0, 256, %s24_s10, [#allocation3], %s914_s17, %s914_s17, %s915_s18  }
  0x36   :  { %s814_s25 = scalar_lea.hbm %s1113_s2, 256 }
  0x37   :  { %p815_p10 = scmp.ne.s32.totalorder %s1113_s2, %s814_s25  ;;  %p818_p11 = scmp.lt.u32.totalorder %s814_s25, %s1113_s2 }
  0x39   :  { %p820_p12 = pnand %p818_p11, %p815_p10 }
  0x3b   :  { %823 = shalt.err (!%p820_p12)
}
  0x3c   :  { %s824_s28 = scalar_lea.vmem %s1003_s12, 256  ;;  %p829_p0 = scmp.lt.s32.totalorder %s1003_s12, %s1003_s12 }
  0x3d   :  { %p825_p13 = scmp.ne.s32.totalorder %s1003_s12, %s824_s28  ;;  %p830_p1 = scmp.lt.s32.totalorder %s824_s28, %s824_s28 }
  0x3f   :  { %p831_p2 = por %p830_p1, %p829_p0 }
  0x41   :  { %p832_p3 = pnand %p831_p2, %p825_p13 }
  0x43   :  { %835 = shalt.err (!%p832_p3)
}
  0x44   :  { %53 = dma.hbm_to_vmem [thread:$0]  %s1113_s2, 256, %s1003_s12, [#allocation6], %s914_s17, %s914_s17, %s915_s18  }
  0x45   :  { %s918_s10 = smov [#allocation10]   ;;  %s919_s13 = smov [#allocation11]  }
  0x46   :  { %s71_s11 = sshll.u32 %s918_s10, 4  ;;  %s83_s14 = sshll.u32 %s919_s13, 4  ;;  %s72_s11 = int_to_ptr.vmem [resolvable:$true] %s71_s11  ;;  %s1040_s14 = int_to_ptr.vmem [resolvable:$true] %s83_s14 }
  0x47   :  { %s836_s19 = scalar_lea.hbm %s1115_s4, 2048 }
  0x48   :  { %p837_p4 = scmp.ne.s32.totalorder %s1115_s4, %s836_s19  ;;  %p840_p5 = scmp.lt.u32.totalorder %s836_s19, %s1115_s4 }
  0x4a   :  { %p842_p6 = pnand %p840_p5, %p837_p4 }
  0x4c   :  { %845 = shalt.err (!%p842_p6)
}
  0x4d   :  { %s846_s2 = scalar_lea.vmem %s72_s11, 2048  ;;  %p851_p8 = scmp.lt.s32.totalorder %s72_s11, %s72_s11 }
  0x4e   :  { %p847_p7 = scmp.ne.s32.totalorder %s72_s11, %s846_s2  ;;  %p852_p9 = scmp.lt.s32.totalorder %s846_s2, %s846_s2 }
  0x50   :  { %p853_p10 = por %p852_p9, %p851_p8 }
  0x52   :  { %p854_p11 = pnand %p853_p10, %p847_p7 }
  0x54   :  { %857 = shalt.err (!%p854_p11)
}
  0x55   :  { %77 = dma.hbm_to_vmem [thread:$0]  %s1115_s4, 2048, %s72_s11, [#allocation9], %s914_s17, %s914_s17, %s915_s18  }
  0x56   :  { %s858_s25 = scalar_lea.hbm %s1116_s5, 2048 }
  0x57   :  { %p859_p12 = scmp.ne.s32.totalorder %s1116_s5, %s858_s25  ;;  %p862_p13 = scmp.lt.u32.totalorder %s858_s25, %s1116_s5 }
  0x59   :  { %p864_p0 = pnand %p862_p13, %p859_p12 }
  0x5b   :  { %867 = shalt.err (!%p864_p0)
}
  0x5c   :  { %s868_s28 = scalar_lea.vmem %s1040_s14, 2048  ;;  %p873_p2 = scmp.lt.s32.totalorder %s1040_s14, %s1040_s14 }
  0x5d   :  { %p869_p1 = scmp.ne.s32.totalorder %s1040_s14, %s868_s28  ;;  %p874_p3 = scmp.lt.s32.totalorder %s868_s28, %s868_s28 }
  0x5f   :  { %p875_p4 = por %p874_p3, %p873_p2 }
  0x61   :  { %p876_p5 = pnand %p875_p4, %p869_p1 }
  0x63   :  { %879 = shalt.err (!%p876_p5)
}
  0x64   :  { %89 = dma.hbm_to_vmem [thread:$0]  %s1116_s5, 2048, %s1040_s14, [#allocation12], %s914_s17, %s914_s17, %s915_s18  }
  0x65   :  { %902 = dma.done.wait [#allocation3], 256  }
  0x66   :  { %903 = vsyncadd [#allocation3], 4294967040 }
  0x67   :  { %904 = dma.done.wait [#allocation6], 512  }
  0x68   :  { %905 = vsyncadd [#allocation6], 4294966784 }
  0x69   :  { %906 = dma.done.wait [#allocation9], 2304  }
  0x6a   :  { %907 = vsyncadd [#allocation9], 4294964992 }
  0x6b   :  { %908 = dma.done.wait [#allocation12], 2048  }
  0x6c   :  { %909 = vsyncadd [#allocation12], 4294965248  ;;  %vm120_vm0 = vcmask 130048   ;;  %v118_v0 = vld [vmem:[#allocation8] sm:$0xff]  ;;  %v119_v1 = vld [vmem:[#allocation8 + $0x8] sm:$0xff]  ;;  %s920_s20 = smov [#allocation13]  }
  0x6d   :  { %v114_v2 = vld [vmem:[#allocation7] sm:$0xff]  ;;  %v661_v3 = vpack.c.bf16 %v119_v1, %v118_v0  ;;  %v115_v4 = vld [vmem:[#allocation7 + $0x8] sm:$0xff]  ;;  %v116_v5 = vld [vmem:[#allocation5] sm:$0xff]  ;;  %s509_s21 = sshll.u32 %s920_s20, 4  ;;  %s510_s21 = int_to_ptr.vmem [resolvable:$true] %s509_s21 }
  0x6e   :  { %v112_v6 = vld [vmem:[#allocation2] sm:$0xff]  ;;  %v665_v7 = vpack.c.bf16 %v115_v4, %v114_v2  ;;  %581 = vmatprep.mubr.msk.f32.mxu1 %vm120_vm0, %v116_v5  ;;  %v293_v9 = vld [vmem:[#allocation10 + $0x8] sm:$0xff]  ;;  %v294_v10 = vld [vmem:[#allocation10 + $0x10] sm:$0xff]  ;;  %s880_s3 = scalar_lea.vmem %s510_s21, 256  ;;  %p885_p7 = scmp.lt.s32.totalorder %s510_s21, %s510_s21 }
  0x6f   :  { %588 = vmatprep.mubr.msk.f32.mxu0 %vm120_vm0, %v112_v6  ;;  %v292_v8 = vld [vmem:[#allocation10] sm:$0xff]  ;;  %662 = vmatprep.subr.bf16.mxu1 %v661_v3  ;;  %v295_v11 = vld [vmem:[#allocation10 + $0x18] sm:$0xff]  ;;  %v113_v14 = vld [vmem:[#allocation2 + $0x8] sm:$0xff]  ;;  %p881_p6 = scmp.ne.s32.totalorder %s510_s21, %s880_s3  ;;  %p886_p8 = scmp.lt.s32.totalorder %s880_s3, %s880_s3 }
  0x70   :  { %666 = vmatprep.subr.bf16.mxu0 %v665_v7  ;;  %664 = vmatpush3.bf16.msra.mxu1 %v661_v3  ;;  %v117_v12 = vld [vmem:[#allocation5 + $0x8] sm:$0xff]  ;;  %v669_v13 = vpack.c.bf16 %v293_v9, %v292_v8  ;;  %v673_v15 = vpack.c.bf16 %v295_v11, %v294_v10  ;;  %v296_v16 = vld [vmem:[#allocation10 + $0x20] sm:$0xff]  ;;  %v297_v17 = vld [vmem:[#allocation10 + $0x28] sm:$0xff] }
  0x71   :  { %668 = vmatpush3.bf16.msra.mxu0 %v665_v7  ;;  %v677_v18 = vpack.c.bf16 %v297_v17, %v296_v16  ;;  %v298_v19 = vld [vmem:[#allocation10 + $0x30] sm:$0xff]  ;;  %v299_v20 = vld [vmem:[#allocation10 + $0x38] sm:$0xff]  ;;  %v300_v22 = vld [vmem:[#allocation10 + $0x40] sm:$0xff]  ;;  %p887_p9 = por %p886_p8, %p885_p7 }
  0x72   :  { %670 = vmatprep.subr.bf16.mxu1 %v669_v13  ;;  %v681_v21 = vpack.c.bf16 %v299_v20, %v298_v19  ;;  %v301_v23 = vld [vmem:[#allocation10 + $0x48] sm:$0xff]  ;;  %v302_v25 = vld [vmem:[#allocation10 + $0x50] sm:$0xff]  ;;  %v303_v26 = vld [vmem:[#allocation10 + $0x58] sm:$0xff] }
  0x73   :  { %582 = vmatmul.mubr.msk.f32.vlgmr.msra.gmra.mrb[0].mxu1 %vm120_vm0, %v117_v12  ;;  %v685_v24 = vpack.c.bf16 %v301_v23, %v300_v22  ;;  %v689_v27 = vpack.c.bf16 %v303_v26, %v302_v25  ;;  %v304_v28 = vld [vmem:[#allocation10 + $0x60] sm:$0xff]  ;;  %v305_v29 = vld [vmem:[#allocation10 + $0x68] sm:$0xff]  ;;  %v306_v31 = vld [vmem:[#allocation10 + $0x70] sm:$0xff]  ;;  %p888_p10 = pnand %p887_p9, %p881_p6 }
  0x74   :  { %589 = vmatmul.mubr.msk.f32.vlgmr.msra.gmra.mrb[0].mxu0 %vm120_vm0, %v113_v14  ;;  %672 = vmatpush3.bf16.msra.mxu1 %v669_v13  ;;  %v693_v30 = vpack.c.bf16 %v305_v29, %v304_v28  ;;  %v307_v32 = vld [vmem:[#allocation10 + $0x78] sm:$0xff]  ;;  %v390_v34 = vld [vmem:[#allocation11] sm:$0xff]  ;;  %v391_v35 = vld [vmem:[#allocation11 + $0x8] sm:$0xff] }
  0x75   :  { %674 = vmatprep.subr.bf16.mxu1 %v673_v15  ;;  %v697_v33 = vpack.c.bf16 %v307_v32, %v306_v31  ;;  %v392_v36 = vld [vmem:[#allocation11 + $0x10] sm:$0xff]  ;;  %v701_v37 = vpack.c.bf16 %v391_v35, %v390_v34  ;;  %v393_v38 = vld [vmem:[#allocation11 + $0x18] sm:$0xff]  ;;  %v394_v40 = vld [vmem:[#allocation11 + $0x20] sm:$0xff] }
  0x76   :  { %v705_v39 = vpack.c.bf16 %v393_v38, %v392_v36  ;;  %v395_v41 = vld [vmem:[#allocation11 + $0x28] sm:$0xff]  ;;  %v396_v43 = vld [vmem:[#allocation11 + $0x30] sm:$0xff]  ;;  %v397_v44 = vld [vmem:[#allocation11 + $0x38] sm:$0xff] }
  0x77   :  { %702 = vmatprep.subr.bf16.mxu0 %v701_v37  ;;  %v709_v42 = vpack.c.bf16 %v395_v41, %v394_v40  ;;  %v713_v45 = vpack.c.bf16 %v397_v44, %v396_v43  ;;  %v398_v46 = vld [vmem:[#allocation11 + $0x40] sm:$0xff]  ;;  %v399_v47 = vld [vmem:[#allocation11 + $0x48] sm:$0xff]  ;;  %v400_v49 = vld [vmem:[#allocation11 + $0x50] sm:$0xff] }
  0x78   :  { %676 = vmatpush3.bf16.msra.mxu1 %v673_v15  ;;  %704 = vmatpush3.bf16.msra.mxu0 %v701_v37  ;;  %v717_v48 = vpack.c.bf16 %v399_v47, %v398_v46  ;;  %v401_v50 = vld [vmem:[#allocation11 + $0x58] sm:$0xff]  ;;  %v402_v52 = vld [vmem:[#allocation11 + $0x60] sm:$0xff]  ;;  %v403_v53 = vld [vmem:[#allocation11 + $0x68] sm:$0xff] }
  0x79   :  { %678 = vmatprep.subr.bf16.mxu1 %v677_v18  ;;  %706 = vmatprep.subr.bf16.mxu0 %v705_v39  ;;  %v721_v51 = vpack.c.bf16 %v401_v50, %v400_v49  ;;  %v725_v54 = vpack.c.bf16 %v403_v53, %v402_v52  ;;  %v528_v57 = vld [vmem:[%s1117_s6] ss:$0 sm:$0xff]  ;;  %v404_v2 = vld [vmem:[#allocation11 + $0x70] sm:$0xff]  ;;  %v405_v3 = vld [vmem:[#allocation11 + $0x78] sm:$0xff] }
  0x7a   :  { %v729_v4 = vpack.c.bf16 %v405_v3, %v404_v2  ;;  %v529_v5 = vld [vmem:[%s1117_s6 + $0x1] ss:$0 sm:$0xff]  ;;  %v530_v12 = vld [vmem:[%s1118_s7] ss:$0 sm:$0xff]  ;;  %v532_v19 = vld [vmem:[%s1118_s7 + $0x2] ss:$0 sm:$0xff] }
  0x7b   :  { %v531_v17 = vld [vmem:[%s1118_s7 + $0x1] ss:$0 sm:$0xff] }
  0x7c   :  { %680 = vmatpush3.bf16.msra.mxu1 %v677_v18  ;;  %708 = vmatpush3.bf16.msra.mxu0 %v705_v39 }
  0x7d   :  { %682 = vmatprep.subr.bf16.mxu1 %v681_v21  ;;  %710 = vmatprep.subr.bf16.mxu0 %v709_v42 }
  0x80   :  { %684 = vmatpush3.bf16.msra.mxu1 %v681_v21  ;;  %712 = vmatpush3.bf16.msra.mxu0 %v709_v42 }
  0x81   :  { %686 = vmatprep.subr.bf16.mxu1 %v685_v24  ;;  %714 = vmatprep.subr.bf16.mxu0 %v713_v45 }
  0x84   :  { %688 = vmatpush3.bf16.msra.mxu1 %v685_v24  ;;  %716 = vmatpush3.bf16.msra.mxu0 %v713_v45 }
  0x85   :  { %690 = vmatprep.subr.bf16.mxu1 %v689_v27  ;;  %718 = vmatprep.subr.bf16.mxu0 %v717_v48 }
  0x88   :  { %692 = vmatpush3.bf16.msra.mxu1 %v689_v27  ;;  %720 = vmatpush3.bf16.msra.mxu0 %v717_v48 }
  0x89   :  { %694 = vmatprep.subr.bf16.mxu1 %v693_v30  ;;  %722 = vmatprep.subr.bf16.mxu0 %v721_v51 }
  0x8c   :  { %696 = vmatpush3.bf16.msra.mxu1 %v693_v30  ;;  %724 = vmatpush3.bf16.msra.mxu0 %v721_v51 }
  0x8d   :  { %698 = vmatprep.subr.bf16.mxu1 %v697_v33  ;;  %726 = vmatprep.subr.bf16.mxu0 %v725_v54 }
  0x90   :  { %700 = vmatpush3.bf16.msra.mxu1 %v697_v33  ;;  %728 = vmatpush3.bf16.msra.mxu0 %v725_v54 }
  0x91   :  { %730 = vmatprep.subr.bf16.mxu0 %v729_v4 }
  0x94   :  { %732 = vmatpush3.bf16.msra.mxu0 %v729_v4 }
 0x146   :  { %v583_v55 = vpop.f32.mrb[0].mxu1 }
 0x147   :  { %v590_v56 = vpop.f32.mrb[0].mxu0  ;;  %v193_v58 = vpop.f32.mrb[1].mxu1 }
 0x148   :  { %v280_v59 = vadd.f32 %v590_v56, %v583_v55  ;;  %v274_v60 = vpop.f32.mrb[1].mxu0 }
 0x149   :  { %v275_v61 = vadd.f32 %v274_v60, %v193_v58 }
 0x14a   :  { %v289_v62 = vadd.f32 %v528_v57, %v280_v59 }
 0x14b   :  { %v288_v63 = vadd.f32 %v528_v57, %v275_v61 }
 0x14c   :  { %v291_v1 = vmax.f32 %v289_v62, 0.0 }
 0x14d   :  { %v290_v0 = vmax.f32 %v288_v63, 0.0 }
 0x14f   :  { %623 = vmatprep.mubr.f32.mxu1 %v290_v0 }
 0x150   :  { %624 = vmatmul.mubr.f32.vlgmr.msra.gmra.mrb[2].mxu1 %v291_v1 }
 0x223   :  { %v625_v6 = vpop.f32.mrb[2].mxu1 }
 0x224   :  { %v385_v7 = vadd.f32 %v625_v6, %v529_v5  ;;  %v379_v8 = vpop.f32.mrb[3].mxu1 }
 0x225   :  { %v380_v9 = vadd.f32 %v529_v5, %v379_v8 }
 0x226   :  { %v389_v11 = vmax.f32 %v385_v7, 0.0 }
 0x227   :  { %v388_v10 = vmax.f32 %v380_v9, 0.0 }
 0x229   :  { %658 = vmatprep.mubr.f32.mxu0 %v388_v10 }
 0x22a   :  { %659 = vmatmul.mubr.f32.vlgmr.msra.gmra.mrb[2].mxu0 %v389_v11 }
 0x2fd   :  { %v660_v13 = vpop.f32.mrb[2].mxu0 }
 0x2fe   :  { %v483_v14 = vadd.f32 %v660_v13, %v530_v12  ;;  %v477_v15 = vpop.f32.mrb[3].mxu0 }
 0x2ff   :  { %v478_v16 = vadd.f32 %v530_v12, %v477_v15 }
 0x300   :  { %744 = vtanh.f32 %v483_v14 }
 0x301   :  { %746 = vtanh.f32 %v478_v16 }
 0x30a   :  { %v745_v18 = vpop.eup %744 }
 0x30b   :  { %v747_v20 = vpop.eup %746  ;;  %v494_v21 = vmul.f32 %v745_v18, %v531_v17 }
 0x30c   :  { %v493_v22 = vmul.f32 %v747_v20, %v531_v17 }
 0x30d   :  { %v501_v23 = vadd.f32 %v532_v19, %v494_v21 }
 0x30e   :  { %v500_v24 = vadd.f32 %v532_v19, %v493_v22 }
 0x30f   :  { %503 = vst [vmem:[#allocation13 + $0x8] sm:$0xff] %v501_v23 }
 0x310   :  { %502 = vst [vmem:[#allocation13] sm:$0xff] %v500_v24 }
 0x311   :  { %891 = shalt.err (!%p888_p10)
}
 0x312   :  { %s892_s7 = scalar_lea.hbm %s1119_s8, 256 }
 0x313   :  { %p893_p11 = scmp.ne.s32.totalorder %s1119_s8, %s892_s7  ;;  %p896_p12 = scmp.lt.u32.totalorder %s892_s7, %s1119_s8 }
 0x315   :  { %p898_p13 = pnand %p896_p12, %p893_p11 }
 0x317   :  { %901 = shalt.err (!%p898_p13)
}
 0x318   :  { %515 = dma.vmem_to_hbm [thread:$0]  %s510_s21, 256, %s1119_s8, [#allocation4], %s914_s17, %s914_s17, %s915_s18  }
 0x319   :  { %910 = dma.done.wait [#allocation4], 256  }
 0x31a   :  { %911 = vsyncadd [#allocation4], 4294967040 }
 0x31b   :  { %519 = vsyncpa [#allocation3], 1 }
 0x31c   :  { %520 = vsyncpa [#allocation6], 1 }
 0x31d   :  { %521 = vsyncpa [#allocation9], 1 }
 0x31e   :  { %522 = vsyncpa [#allocation12], 1 }
 0x31f   :  { %523 = vsyncpa [#allocation4], 1 }

</bundles_post_ra>
